<compile_context>
chip_gen: v7x
topology: tpu7x:2x2x1
jax: 0.10.0
libtpu: 0.0.40
codegen_flags: <defaults>
</compile_context>

<pallas_src>
import functools

import jax
import jax.numpy as jnp
from jax.experimental import pallas as pl
from jax.experimental.pallas import tpu as pltpu


def _round_up(n, m):
    return ((n + m - 1) // m) * m


def _round_down(n, m):
    return (n // m) * m


def _vmem_capacity_bytes():
    try:
        return int(pltpu.get_tpu_info().vmem_capacity_bytes)
    except Exception:
        return 64 << 20  # conservative (v7x-sized) fallback


def _logreg_kernel(x_ref, w_ref, b_ref, o_ref, acc_ref):
    """One (batch-tile i, feature-tile k) grid step.

    x_ref:   (TB, TK) streamed batch tile (VMEM, auto double-buffered)
    w_ref:   (1, TK)  weight slice (VMEM)
    b_ref:   (1,)     bias scalar (SMEM)
    o_ref:   (1, TB)  lane-dense output row slab (resident across k)
    acc_ref: (1, TB)  f32 partial-logit accumulator (VMEM scratch)
    """
    k = pl.program_id(1)

    @pl.when(k == 0)
    def _():
        acc_ref[...] = jnp.zeros_like(acc_ref)

    # (1, TK) contracted with (TB, TK) over K -> lane-dense (1, TB) partial logits.
    acc_ref[...] += jax.lax.dot_general(
        w_ref[...], x_ref[...],
        dimension_numbers=(((1,), (1,)), ((), ())),
        preferred_element_type=jnp.float32,
    )

    @pl.when(k == pl.num_programs(1) - 1)
    def _():
        o_ref[...] = jax.nn.sigmoid(acc_ref[...] + b_ref[0]).astype(o_ref.dtype)


@functools.partial(jax.jit, static_argnames=("stream_dtype",))
def logistic_regression_forward(x, w, b, *, stream_dtype=None):
    """sigmoid(x @ w.T + b).

    x: (B, D), w: (1, D) (PyTorch nn.Linear layout), b: (1,)  ->  (B, 1) f32.
    stream_dtype: optionally cast x/w (e.g. jnp.bfloat16) to halve the HBM
      traffic that bounds this kernel; MXU accumulation stays f32.
    """
    B, D = x.shape
    if stream_dtype is not None:
        x = x.astype(stream_dtype)
        w = w.astype(stream_dtype)
    b = b.astype(jnp.float32)
    itemsize = jnp.dtype(x.dtype).itemsize

    # ---- generation-aware VMEM budget --------------------------------------
    vmem_cap = _vmem_capacity_bytes()                 # 64 MiB v7x, 128 MiB v5e/v6e
    # Target bytes for ONE x tile (the pipeline double-buffers it): ~1/8 of
    # physical VMEM, clamped to the 4-16 MiB sweet spot for HBM streaming.
    per_tile = int(min(max(vmem_cap // 8, 4 << 20), 16 << 20))

    # ---- K (feature) tiling -------------------------------------------------
    # Keep D un-split while a full-D tile of >=512 rows still fits the per-tile
    # budget; beyond that, split K so the batch tile can stay >=1024 rows.
    if per_tile // (itemsize * D) >= 512:
        tk, d_pad, num_k = D, D, 1
    else:
        tk_target = max(128, _round_down(per_tile // (itemsize * 1024), 128))
        num_k = -(-D // tk_target)
        tk = _round_up(-(-D // num_k), 128)           # minimize column padding
        d_pad = tk * num_k

    # ---- batch tiling -------------------------------------------------------
    tb_budget = max(128, _round_down(per_tile // (itemsize * tk), 128))
    if B <= 256:
        tb = _round_up(B, 8)            # one tile; full-dim block is legal
    else:
        # Cap at ~half the batch so the "parallel" axis has >=2 tiles (keeps
        # both v7x TensorCores busy), then clamp to the VMEM budget and
        # rebalance the tile size to minimize row padding.
        half_cap = _round_up(-(-B // 2), 128)
        tb = max(128, min(tb_budget, half_cap))
        nb = -(-B // tb)
        tb = max(128, _round_up(-(-B // nb), 128))
    b_pad = _round_up(B, tb)
    num_b = b_pad // tb

    # ---- padding (zero rows/cols contribute nothing; extra rows sliced off) -
    if (b_pad, d_pad) != (B, D):
        x = jnp.pad(x, ((0, b_pad - B), (0, d_pad - D)))
    if d_pad != D:
        w = jnp.pad(w, ((0, 0), (0, d_pad - D)))

    # ---- VMEM limit: sized to the actual buffers, capped at 60% of physical -
    x_buf = 2 * tb * tk * itemsize                    # double-buffered x tiles
    w_buf = 2 * 8 * tk * itemsize                     # sublane-padded w slices
    o_buf = 2 * 8 * tb * 4 + 8 * tb * 4               # output slabs + accumulator
    vmem_limit = int(min(max(x_buf + w_buf + o_buf + (4 << 20), 16 << 20),
                         int(vmem_cap * 0.6)))

    out_row = pl.pallas_call(
        _logreg_kernel,
        out_shape=jax.ShapeDtypeStruct((1, b_pad), jnp.float32),
        grid=(num_b, num_k),
        in_specs=[
            pl.BlockSpec((tb, tk), lambda i, k: (i, k)),           # x: streamed
            pl.BlockSpec((1, tk), lambda i, k: (0, k)),            # w: tiny slice
            pl.BlockSpec(memory_space=pltpu.MemorySpace.SMEM),     # bias scalar
        ],
        out_specs=pl.BlockSpec((1, tb), lambda i, k: (0, i)),      # lane-dense row
        scratch_shapes=[pltpu.VMEM((1, tb), jnp.float32)],         # logit accumulator
        compiler_params=pltpu.CompilerParams(
            dimension_semantics=("parallel", "arbitrary"),
            vmem_limit_bytes=vmem_limit,
        ),
        cost_estimate=pl.CostEstimate(
            flops=2 * b_pad * d_pad,
            transcendentals=b_pad,
            bytes_accessed=itemsize * (b_pad * d_pad + d_pad) + 4 * (1 + b_pad),
        ),
    )(x, w, b)

    return out_row.reshape(b_pad)[:B].reshape(B, 1)


if __name__ == "__main__":
    def reference(x, w, b):
        return jax.nn.sigmoid(
            jnp.dot(x, w.T, precision=jax.lax.Precision.HIGHEST) + b)

    # --- small shapes matching the module (batch=8, input_dim=32) -----------
    kx, kw, kb = jax.random.split(jax.random.PRNGKey(0), 3)
    batch, input_dim = 8, 32
    x = jax.random.normal(kx, (batch, input_dim), dtype=jnp.float32)
    bound = 1.0 / (input_dim ** 0.5)        # nn.Linear default init range
    w = jax.random.uniform(kw, (1, input_dim), jnp.float32, -bound, bound)
    b = jax.random.uniform(kb, (1,), jnp.float32, -bound, bound)

    out = logistic_regression_forward(x, w, b)
    jax.block_until_ready(out)
    assert out.shape == (batch, 1)
    assert jnp.allclose(out, reference(x, w, b), atol=1e-6), "small-case mismatch"

    # --- larger case exercising the K-split + 2-tile parallel batch path ----
    kx2, kw2, kb2 = jax.random.split(jax.random.PRNGKey(1), 3)
    batch2, input_dim2 = 300, 8704          # forces the K split on every generation
    x2 = jax.random.normal(kx2, (batch2, input_dim2), dtype=jnp.float32)
    bound2 = 1.0 / (input_dim2 ** 0.5)
    w2 = jax.random.uniform(kw2, (1, input_dim2), jnp.float32, -bound2, bound2)
    b2 = jax.random.uniform(kb2, (1,), jnp.float32, -bound2, bound2)

    out2 = logistic_regression_forward(x2, w2, b2)
    jax.block_until_ready(out2)
    assert out2.shape == (batch2, 1)
    # Loose-ish tolerance: f32 matmul pass-count/accumulation order may differ
    # slightly between XLA and Mosaic for a D~8.7K contraction.
    assert jnp.allclose(out2, reference(x2, w2, b2), atol=1e-4), "large-case mismatch"

    print("KERNEL_OK")
</pallas_src>

<mosaic_0001>
module attributes {stable_mosaic.version = 11 : i64} {
  func.func @_logreg_kernel(%arg0: i32, %arg1: i32, %arg2: memref<8x32xf32, #tpu.memory_space<vmem>>, %arg3: memref<1x32xf32, #tpu.memory_space<vmem>>, %arg4: memref<1xf32, #tpu.memory_space<smem>>, %arg5: memref<1x8xf32, #tpu.memory_space<vmem>>, %arg6: memref<1x8xf32, #tpu.memory_space<vmem>>) attributes {dimension_semantics = [#tpu.dimension_semantics<parallel>, #tpu.dimension_semantics<arbitrary>], iteration_bounds = array<i64: 1, 1>, scalar_prefetch = 0 : i64, scratch_operands = 1 : i64, tpu.core_type = #tpu.core_type<tc>, window_params = [{transform_indices = @transform_0, window_bounds = array<i64: 8, 32>}, {transform_indices = @transform_1, window_bounds = array<i64: 1, 32>}, {transform_indices = @transform_2, window_bounds = array<i64: 1>}, {transform_indices = @transform_3, window_bounds = array<i64: 1, 8>}]} {
    %c0_i32 = arith.constant 0 : i32
    %0 = arith.cmpi eq, %arg1, %c0_i32 : i32
    %1 = arith.extui %0 : i1 to i32
    %c0_i32_0 = arith.constant 0 : i32
    %2 = arith.cmpi ne, %1, %c0_i32_0 : i32
    scf.if %2 {
      %cst_10 = arith.constant 0.000000e+00 : f32
      %12 = vector.broadcast %cst_10 : f32 to vector<1x8xf32>
      %c0_11 = arith.constant 0 : index
      %c0_12 = arith.constant 0 : index
      %13 = vector.load %arg6[%c0_11, %c0_12] : memref<1x8xf32, #tpu.memory_space<vmem>>, vector<1x8xf32>
      tpu.vector_store %arg6[%c0_11, %c0_12], %12 {strides = array<i32>} : memref<1x8xf32, #tpu.memory_space<vmem>>, vector<1x8xf32>,
    } else {
    }
    %c0 = arith.constant 0 : index
    %c0_1 = arith.constant 0 : index
    %3 = vector.load %arg6[%c0, %c0_1] : memref<1x8xf32, #tpu.memory_space<vmem>>, vector<1x8xf32>
    %c0_2 = arith.constant 0 : index
    %c0_3 = arith.constant 0 : index
    %4 = vector.load %arg3[%c0_2, %c0_3] : memref<1x32xf32, #tpu.memory_space<vmem>>, vector<1x32xf32>
    %c0_4 = arith.constant 0 : index
    %c0_5 = arith.constant 0 : index
    %5 = vector.load %arg2[%c0_4, %c0_5] : memref<8x32xf32, #tpu.memory_space<vmem>>, vector<8x32xf32>
    %cst = arith.constant dense<0.000000e+00> : vector<1x8xf32>
    %6 = tpu.matmul %4, %5, %cst {dimension_numbers = #tpu.dot_dimension_numbers<[1], [1], [0], [0], [0, 0, 1, 0], [], []>} : vector<1x32xf32>, vector<8x32xf32>, vector<1x8xf32> -> vector<1x8xf32>
    %7 = arith.addf %3, %6 : vector<1x8xf32>
    %c0_6 = arith.constant 0 : index
    %c0_7 = arith.constant 0 : index
    %8 = vector.load %arg6[%c0_6, %c0_7] : memref<1x8xf32, #tpu.memory_space<vmem>>, vector<1x8xf32>
    tpu.vector_store %arg6[%c0_6, %c0_7], %7 {strides = array<i32>} : memref<1x8xf32, #tpu.memory_space<vmem>>, vector<1x8xf32>,
    %c0_i32_8 = arith.constant 0 : i32
    %9 = arith.cmpi eq, %arg1, %c0_i32_8 : i32
    %10 = arith.extui %9 : i1 to i32
    %c0_i32_9 = arith.constant 0 : i32
    %11 = arith.cmpi ne, %10, %c0_i32_9 : i32
    scf.if %11 {
      %c0_10 = arith.constant 0 : index
      %c0_11 = arith.constant 0 : index
      %12 = vector.load %arg6[%c0_10, %c0_11] : memref<1x8xf32, #tpu.memory_space<vmem>>, vector<1x8xf32>
      %c0_12 = arith.constant 0 : index
      %13 = memref.load %arg4[%c0_12] : memref<1xf32, #tpu.memory_space<smem>>
      %14 = vector.broadcast %13 : f32 to vector<1x8xf32>
      %15 = arith.addf %12, %14 : vector<1x8xf32>
      %16 = arith.negf %15 : vector<1x8xf32>
      %17 = math.exp %16 : vector<1x8xf32>
      %cst_13 = arith.constant 1.000000e+00 : f32
      %18 = vector.broadcast %cst_13 : f32 to vector<1x8xf32>
      %19 = arith.addf %18, %17 : vector<1x8xf32>
      %20 = arith.divf %18, %19 : vector<1x8xf32>
      %c0_14 = arith.constant 0 : index
      %c0_15 = arith.constant 0 : index
      %21 = vector.load %arg5[%c0_14, %c0_15] : memref<1x8xf32, #tpu.memory_space<vmem>>, vector<1x8xf32>
      tpu.vector_store %arg5[%c0_14, %c0_15], %20 {strides = array<i32>} : memref<1x8xf32, #tpu.memory_space<vmem>>, vector<1x8xf32>,
    } else {
    }
    return
  }
  func.func @transform_0(%arg0: i32, %arg1: i32) -> (i32, i32) {
    %c0_i32 = arith.constant 0 : i32
    return %arg0, %arg1 : i32, i32
  }
  func.func @transform_1(%arg0: i32, %arg1: i32) -> (i32, i32) {
    %c0_i32 = arith.constant 0 : i32
    %c0_i32_0 = arith.constant 0 : i32
    return %c0_i32, %arg1 : i32, i32
  }
  func.func @transform_2(%arg0: i32, %arg1: i32) -> i32 {
    %c0_i32 = arith.constant 0 : i32
    %c0_i32_0 = arith.constant 0 : i32
    return %c0_i32 : i32
  }
  func.func @transform_3(%arg0: i32, %arg1: i32) -> (i32, i32) {
    %c0_i32 = arith.constant 0 : i32
    %c0_i32_0 = arith.constant 0 : i32
    return %c0_i32, %arg0 : i32, i32
  }
}

</mosaic_0001>

<bundles_post_ra>
// kernel: logistic_regression_forward.1
= control target key start
LH: loop header
LB: loop body
LE: loop exit
PB: predicated region body
PF: predicated region fallthrough
CT: control target
= control target key end

     0   :  { %9 = vsyncpa [#allocation5], 0  ;;  %s269_s0 = inlined_call_operand.hbm [shape: f32[8,32], index: 0, kind: input, shape index: {}]   ;;  %s270_s1 = inlined_call_operand.vmem [shape: f32[1,32], index: 1, kind: input, shape index: {}]   ;;  %s271_s2 = inlined_call_operand.<no memory space> [shape: f32[1], index: 2, kind: input, shape index: {}]   ;;  %s272_s3 = inlined_call_operand.hbm [shape: f32[1,8], index: 3, kind: output, shape index: {}]  }
   0x1   :  { %10 = vsyncpa [#allocation6], 0  ;;  %s212_s12 = smov [#allocation4]   ;;  %s164_s16 = scalar_lea.hbm %s269_s0, 128 }
   0x2   :  { %s17_s13 = sshll.u32 %s212_s12, 4  ;;  %p165_p0 = scmp.ne.s32.totalorder %s269_s0, %s164_s16  ;;  %s18_s13 = int_to_ptr.vmem [resolvable:$true] %s17_s13 }
   0x3   :  { %p168_p1 = scmp.lt.u32.totalorder %s164_s16, %s269_s0 }
   0x5   :  { %p170_p2 = pnand %p168_p1, %p165_p0 }
   0x7   :  { %173 = shalt.err (!%p170_p2)
}
   0x8   :  { %s174_s21 = scalar_lea.vmem %s18_s13, 128  ;;  %p179_p4 = scmp.lt.s32.totalorder %s18_s13, %s18_s13 }
   0x9   :  { %p175_p3 = scmp.ne.s32.totalorder %s18_s13, %s174_s21  ;;  %p180_p5 = scmp.lt.s32.totalorder %s174_s21, %s174_s21 }
   0xb   :  { %p181_p6 = por %p180_p5, %p179_p4 }
   0xd   :  { %p182_p7 = pnand %p181_p6, %p175_p3 }
   0xf   :  { %185 = shalt.err (!%p182_p7)
}
  0x10   :  { %20 = dma.hbm_to_vmem [thread:$0]  %s269_s0, 128, %s18_s13, [#allocation5]  }
  0x11   :  { %208 = dma.done.wait [#allocation5], 128  }
  0x12   :  { %209 = vsyncadd [#allocation5], 4294967168  ;;  %vm32_vm0 = vcmask 57344   ;;  %v213_v0 = vmov 0.0   ;;  %vm214_vm1 = vmmov 0   ;;  %vm37_vm2 = vcmask 261120  }
  0x13   :  { %33 = vst.msk [vmem:[#allocation2] sm:$0x1] %vm32_vm0, %v213_v0  ;;  %151 = vmatprep.subr.mxu0 %v213_v0  ;;  %153 = vmatprep.mubr.msk.f32.mxu0 %vm214_vm1, %v213_v0  ;;  %v36_v1 = vld [vmem:[#allocation4] sm:$0xff]  ;;  %v35_v2 = vld [vmem:[%s270_s1] sm:$0x1]  ;;  %v122_v7 = vstv %s271_s2  ;;  %s215_s27 = smov [#allocation7]  }
  0x14   :  { %152 = vmatpush3.xpose.msk.msra.mxu0 %vm37_vm2, %v36_v1  ;;  %s137_s1 = sshll.u32 %s215_s27, 4  ;;  %s138_s1 = int_to_ptr.vmem [resolvable:$true] %s137_s1 }
  0x15   :  { %s186_s28 = scalar_lea.vmem %s138_s1, 16  ;;  %s190_s29 = scalar_lea.vmem %s138_s1, 32 }
  0x16   :  { %p187_p8 = scmp.ne.s32.totalorder %s138_s1, %s186_s28  ;;  %p191_p9 = scmp.lt.s32.totalorder %s138_s1, %s138_s1 }
  0x17   :  { %154 = vmatmul.mubr.msk.f32.vlgmr.msra.gmra.mrb[0].mxu0 %vm37_vm2, %v35_v2  ;;  %p192_p10 = scmp.lt.s32.totalorder %s190_s29, %s186_s28 }
  0x19   :  { %p193_p11 = por %p192_p10, %p191_p9 }
  0x1a   :  { %v34_v3 = vld [vmem:[#allocation2] sm:$0x1] }
  0x1b   :  { %p194_p12 = pnand %p193_p11, %p187_p8 }
  0xea   :  { %v110_v4 = vpop.f32.mrb[0].mxu0 }
  0xeb   :  { %v114_v5 = vadd.f32 %v110_v4, %v34_v3  ;;  %v155_v6 = vpop.f32.mrb[1].mxu0 }
  0xed   :  { %116 = vst.msk [vmem:[#allocation2] sm:$0x1] %vm32_vm0, %v114_v5 }
  0xf4   :  { %v120_v8 = vld [vmem:[#allocation2] sm:$0x1] }
  0xf5   :  { %v123_v9 = vadd.f32 %v122_v7, %v120_v8 }
  0xf7   :  { %v148_v10 = vmul.f32 -1.442695, %v123_v9 }
  0xf9   :  { %160 = vpow2.f32 %v148_v10 }
 0x103   :  { %v161_v11 = vpop.eup %160 }
 0x104   :  { %v127_v12 = vadd.f32 1.0, %v161_v11 }
 0x106   :  { %162 = vrcp.f32 %v127_v12 }
 0x110   :  { %v163_v13 = vpop.eup %162 }
 0x111   :  { %130 = vst.msk [vmem:[#allocation7] sm:$0x1] %vm32_vm0, %v163_v13 }
 0x112   :  { %197 = shalt.err (!%p194_p12)
}
 0x113   :  { %s198_s4 = scalar_lea.hbm %s272_s3, 16 }
 0x114   :  { %p199_p13 = scmp.ne.s32.totalorder %s272_s3, %s198_s4  ;;  %p202_p0 = scmp.lt.u32.totalorder %s198_s4, %s272_s3 }
 0x116   :  { %p204_p1 = pnand %p202_p0, %p199_p13 }
 0x118   :  { %207 = shalt.err (!%p204_p1)
}
 0x119   :  { %140 = dma.vmem_to_hbm [thread:$0]  %s138_s1, 16, %s272_s3, [#allocation6]  }
 0x11a   :  { %210 = dma.done.wait [#allocation6], 16  }
 0x11b   :  { %211 = vsyncadd [#allocation6], 4294967280 }
 0x11c   :  { %144 = vsyncpa [#allocation5], 1 }
 0x11d   :  { %145 = vsyncpa [#allocation6], 1 }

</bundles_post_ra>
